<compile_context>
chip_gen: v7x
topology: tpu7x:2x2x1
jax: 0.10.0
libtpu: 0.0.40
codegen_flags: <defaults>
</compile_context>

<pallas_src>
import functools

import jax
import jax.numpy as jnp
from jax.experimental import pallas as pl
from jax.experimental.pallas import tpu as pltpu

LANE = 128      # lane width (last dim)
SUBLANE = 8     # sublane width (second-to-last dim)


def _round_up(x, m):
    return (x + m - 1) // m * m


# ----------------------------------------------------------------------------
# Fused kernel
# ----------------------------------------------------------------------------
def _fused_mlp_kernel(t_ref, f_ref, e_ref, *refs, n_mid):
    """refs = (w_t, w_f, w_e, b0, [w_i, b_i]*n_mid, w_last, b_last, o_ref).

    Weights are bf16, pre-transposed to (in, out) (except w_last which stays
    (out, in) because the last matmul is emitted transposed).  Biases are f32.
    Matmuls run in bf16 with f32 accumulation; bias-add / ReLU in f32.
    Only the tiny transposed logits block (8, block_b) is written to HBM.
    """
    o_ref = refs[-1]
    w_t, w_f, w_e, b0 = refs[0], refs[1], refs[2], refs[3]
    mid = refs[4:4 + 2 * n_mid]
    w_last, b_last = refs[4 + 2 * n_mid], refs[5 + 2 * n_mid]

    f32, bf16 = jnp.float32, jnp.bfloat16

    # Branch layer: three bf16 dots whose real output columns are disjoint
    # ranges of one 128-wide accumulator -> torch.cat is free (no lane shifts).
    h = (jnp.dot(t_ref[...].astype(bf16), w_t[...], preferred_element_type=f32)
         + jnp.dot(f_ref[...].astype(bf16), w_f[...], preferred_element_type=f32)
         + jnp.dot(e_ref[...].astype(bf16), w_e[...], preferred_element_type=f32)
         + b0[...])
    h = jnp.maximum(h, 0.0)

    # fn_layers (ReLU after each).
    for i in range(n_mid):
        w = mid[2 * i][...]
        b = mid[2 * i + 1][...]
        h = jnp.dot(h.astype(bf16), w, preferred_element_type=f32) + b
        h = jnp.maximum(h, 0.0)

    # fn_last, emitted transposed: (out_pad=8, block_b) lane-dense block so the
    # HBM write-back is 8 sublanes instead of 128 padded logit lanes.
    logits_t = (jnp.dot(w_last[...], h.T.astype(bf16),
                        preferred_element_type=f32)
                + b_last[...])
    o_ref[...] = logits_t.astype(o_ref.dtype)


# ----------------------------------------------------------------------------
# Parameter init (PyTorch nn.Linear layout: W is (out, in)) and packing
# ----------------------------------------------------------------------------
def init_params(key, num_tokens, num_features, emb_size, layers):
    """Deterministic synthetic parameter init matching nn.Linear shapes."""
    layers = [layers] if isinstance(layers, int) else list(layers)
    half = layers[0] // 2

    def lin(k, out_d, in_d):
        kw, kb = jax.random.split(k)
        scale = 1.0 / jnp.sqrt(jnp.float32(in_d))
        w = jax.random.uniform(kw, (out_d, in_d), jnp.float32, -scale, scale)
        b = jax.random.uniform(kb, (out_d,), jnp.float32, -scale, scale)
        return w, b

    keys = jax.random.split(key, 4 + len(layers) - 1)
    params = {}
    params["token"] = lin(keys[0], half, num_tokens)
    params["feature"] = lin(keys[1], half, num_features)
    params["embedding"] = lin(keys[2], emb_size, emb_size)

    layers = list(layers)
    layers[0] = layers[0] + emb_size          # as in the PyTorch __init__
    fn = []
    for i in range(len(layers) - 1):
        fn.append(lin(keys[3 + i], layers[i + 1], layers[i]))
    params["fn_layers"] = fn
    params["fn_last"] = lin(keys[3 + len(layers) - 1], 4, layers[-1])
    return params


def pack_params(params):
    """Pack PyTorch-layout params into bf16 weights / f32 biases for the kernel.

    * Branch weights w_t/w_f/w_e are pre-transposed to (in, N0_pad) with their
      real columns placed at the branch's offset inside the concat, so three
      dots sum straight into the concatenated hidden vector.
    * fn_layers weights are (K_pad_prev, N_pad) pre-transposed.
    * fn_last stays (out, in) padded to (8, K_pad) because the final matmul is
      computed transposed; its bias is an (8, 1) column.
    All padding is explicit zeros (pads provably contribute nothing).
    """
    bf16 = jnp.bfloat16
    wt, bt = params["token"]        # (half, num_tokens)
    wf, bf_ = params["feature"]     # (half, num_features)
    we, be = params["embedding"]    # (emb, emb)
    half = wt.shape[0]
    emb = we.shape[0]

    n0 = 2 * half + emb
    n0_pad = _round_up(n0, LANE)

    def col_block(w, col_off):
        out_d, in_d = w.shape
        z = jnp.zeros((in_d, n0_pad), bf16)
        return z.at[:, col_off:col_off + out_d].set(w.T.astype(bf16))

    w_t = col_block(wt, 0)
    w_f = col_block(wf, half)
    w_e = col_block(we, 2 * half)
    b0 = jnp.zeros((1, n0_pad), jnp.float32).at[0, :n0].set(
        jnp.concatenate([bt, bf_, be]))

    mid = []
    k_pad = n0_pad
    for (w, b) in params["fn_layers"]:            # w: (out, in)
        n, k = w.shape
        n_pad = _round_up(n, LANE)
        wp = jnp.zeros((k_pad, n_pad), bf16).at[:k, :n].set(w.T.astype(bf16))
        bp = jnp.zeros((1, n_pad), jnp.float32).at[0, :n].set(b)
        mid.append((wp, bp))
        k_pad = n_pad

    wl, bl = params["fn_last"]                    # (4, in)
    n_out, k = wl.shape
    w_last = jnp.zeros((SUBLANE, k_pad), bf16).at[:n_out, :k].set(
        wl.astype(bf16))
    b_last = jnp.zeros((SUBLANE, 1), jnp.float32).at[:n_out, 0].set(bl)

    return {"w_t": w_t, "w_f": w_f, "w_e": w_e, "b0": b0,
            "mid": mid, "w_last": w_last, "b_last": b_last}


# ----------------------------------------------------------------------------
# Forward wrapper: one pallas_call, no wrapper-side activation copies
# ----------------------------------------------------------------------------
@functools.partial(jax.jit, static_argnames=("block_b",))
def mlpnet_forward(packed, token, feature, embedding, *, block_b=512):
    """Pallas MLPNet.forward (eval-mode: dropouts are identity)."""
    batch = token.shape[0]
    n_mid = len(packed["mid"])

    token = token.astype(jnp.float32)
    feature = feature.astype(jnp.float32)
    embedding = embedding.astype(jnp.float32)

    # Batch tiling: 1-D "parallel" grid.  Single full-extent block when the
    # (8-rounded) batch fits in one tile, else 128-multiple tiles so the
    # transposed output blocks stay lane-dense.  (On v7x pass a smaller
    # block_b for mid-size batches to keep >=2 grid steps / both TCs busy.)
    b_pad8 = _round_up(batch, SUBLANE)
    if b_pad8 <= block_b:
        block_b = b_pad8
    else:
        block_b = _round_up(block_b, LANE)
    b_pad = _round_up(b_pad8, block_b)

    def pad_rows(x):
        if b_pad == batch:
            return x
        return jnp.pad(x, ((0, b_pad - batch), (0, 0)))

    t_p, f_p, e_p = pad_rows(token), pad_rows(feature), pad_rows(embedding)

    flat = [packed["w_t"], packed["w_f"], packed["w_e"], packed["b0"]]
    for w, b in packed["mid"]:
        flat += [w, b]
    flat += [packed["w_last"], packed["b_last"]]

    vmem_spec = pl.BlockSpec(memory_space=pltpu.MemorySpace.VMEM)
    in_specs = [
        pl.BlockSpec((block_b, token.shape[1]), lambda i: (i, 0)),
        pl.BlockSpec((block_b, feature.shape[1]), lambda i: (i, 0)),
        pl.BlockSpec((block_b, embedding.shape[1]), lambda i: (i, 0)),
    ] + [vmem_spec] * len(flat)
    out_specs = pl.BlockSpec((SUBLANE, block_b), lambda i: (0, i))

    # Advisory cost estimate so XLA schedules around the call.
    flops = 2 * b_pad * (
        token.shape[1] * packed["w_t"].shape[1]
        + feature.shape[1] * packed["w_f"].shape[1]
        + embedding.shape[1] * packed["w_e"].shape[1]
        + sum(w.shape[0] * w.shape[1] for w, _ in packed["mid"])
        + packed["w_last"].shape[0] * packed["w_last"].shape[1])
    bytes_accessed = (
        4 * b_pad * (token.shape[1] + feature.shape[1] + embedding.shape[1])
        + sum(int(x.size) * x.dtype.itemsize for x in flat)
        + 4 * SUBLANE * b_pad)
    cost = pl.CostEstimate(flops=int(flops), transcendentals=0,
                           bytes_accessed=int(bytes_accessed))

    logits_t = pl.pallas_call(
        functools.partial(_fused_mlp_kernel, n_mid=n_mid),
        out_shape=jax.ShapeDtypeStruct((SUBLANE, b_pad), jnp.float32),
        grid=(b_pad // block_b,),
        in_specs=in_specs,
        out_specs=out_specs,
        compiler_params=pltpu.CompilerParams(
            dimension_semantics=("parallel",)),
        cost_estimate=cost,
    )(t_p, f_p, e_p, *flat)

    # (8, b_pad) transposed logits -> (batch, 4)
    return logits_t[:4, :batch].T


# ----------------------------------------------------------------------------
# Pure-JAX reference (eval-mode semantics of the PyTorch module, f32)
# ----------------------------------------------------------------------------
def mlpnet_reference(params, token, feature, embedding):
    def lin(x, wb):
        w, b = wb
        return x @ w.T + b

    t = jax.nn.relu(lin(token, params["token"]))
    f = jax.nn.relu(lin(feature, params["feature"]))
    e = jax.nn.relu(lin(embedding, params["embedding"]))
    out = jnp.concatenate([t, f, e], axis=-1)
    for wb in params["fn_layers"]:
        out = jax.nn.relu(lin(out, wb))
    return lin(out, params["fn_last"])


if __name__ == "__main__":
    # Small shapes consistent with the module's forward:
    #   token:     (batch, num_tokens)
    #   feature:   (batch, num_features)
    #   embedding: (batch, emb_size)
    batch = 8
    num_tokens = 16
    num_features = 24
    emb_size = 32
    layers = [64, 48]   # layers[0]/2 = 32 per branch; hidden 64+32=96 -> 48 -> 4

    key = jax.random.PRNGKey(0)
    k_params, k_tok, k_feat, k_emb = jax.random.split(key, 4)

    params = init_params(k_params, num_tokens, num_features, emb_size, layers)
    packed = pack_params(params)

    token = jax.random.normal(k_tok, (batch, num_tokens), jnp.float32)
    feature = jax.random.normal(k_feat, (batch, num_features), jnp.float32)
    embedding = jax.random.normal(k_emb, (batch, emb_size), jnp.float32)

    logits = mlpnet_forward(packed, token, feature, embedding)
    logits = jax.block_until_ready(logits)
    assert logits.shape == (batch, 4), logits.shape

    ref = mlpnet_reference(params, token, feature, embedding)
    # bf16 matmul operands with f32 accumulation -> loosened tolerance.
    assert jnp.allclose(logits, ref, rtol=5e-2, atol=5e-2), (
        "Pallas output does not match JAX reference")

    print("KERNEL_OK")
</pallas_src>

<mosaic_0001>
module attributes {stable_mosaic.version = 11 : i64} {
  func.func @_fused_mlp_kernel(%arg0: i32, %arg1: memref<8x16xf32, #tpu.memory_space<vmem>>, %arg2: memref<8x24xf32, #tpu.memory_space<vmem>>, %arg3: memref<8x32xf32, #tpu.memory_space<vmem>>, %arg4: memref<16x128xbf16, #tpu.memory_space<vmem>>, %arg5: memref<24x128xbf16, #tpu.memory_space<vmem>>, %arg6: memref<32x128xbf16, #tpu.memory_space<vmem>>, %arg7: memref<1x128xf32, #tpu.memory_space<vmem>>, %arg8: memref<128x128xbf16, #tpu.memory_space<vmem>>, %arg9: memref<1x128xf32, #tpu.memory_space<vmem>>, %arg10: memref<8x128xbf16, #tpu.memory_space<vmem>>, %arg11: memref<8x1xf32, #tpu.memory_space<vmem>>, %arg12: memref<8x8xf32, #tpu.memory_space<vmem>>) attributes {dimension_semantics = [#tpu.dimension_semantics<parallel>], iteration_bounds = array<i64: 1>, scalar_prefetch = 0 : i64, scratch_operands = 0 : i64, tpu.core_type = #tpu.core_type<tc>, window_params = [{transform_indices = @transform_0, window_bounds = array<i64: 8, 16>}, {transform_indices = @transform_1, window_bounds = array<i64: 8, 24>}, {transform_indices = @transform_2, window_bounds = array<i64: 8, 32>}, {pipeline_mode = #tpu.pipeline_mode<synchronous>, transform_indices = @transform_3, window_bounds = array<i64: 16, 128>}, {pipeline_mode = #tpu.pipeline_mode<synchronous>, transform_indices = @transform_4, window_bounds = array<i64: 24, 128>}, {pipeline_mode = #tpu.pipeline_mode<synchronous>, transform_indices = @transform_5, window_bounds = array<i64: 32, 128>}, {pipeline_mode = #tpu.pipeline_mode<synchronous>, transform_indices = @transform_6, window_bounds = array<i64: 1, 128>}, {pipeline_mode = #tpu.pipeline_mode<synchronous>, transform_indices = @transform_7, window_bounds = array<i64: 128, 128>}, {pipeline_mode = #tpu.pipeline_mode<synchronous>, transform_indices = @transform_8, window_bounds = array<i64: 1, 128>}, {pipeline_mode = #tpu.pipeline_mode<synchronous>, transform_indices = @transform_9, window_bounds = array<i64: 8, 128>}, {pipeline_mode = #tpu.pipeline_mode<synchronous>, transform_indices = @transform_10, window_bounds = array<i64: 8, 1>}, {transform_indices = @transform_11, window_bounds = array<i64: 8, 8>}]} {
    %c0 = arith.constant 0 : index
    %c0_0 = arith.constant 0 : index
    %0 = vector.load %arg1[%c0, %c0_0] : memref<8x16xf32, #tpu.memory_space<vmem>>, vector<8x16xf32>
    %1 = arith.truncf %0 : vector<8x16xf32> to vector<8x16xbf16>
    %c0_1 = arith.constant 0 : index
    %c0_2 = arith.constant 0 : index
    %2 = vector.load %arg4[%c0_1, %c0_2] : memref<16x128xbf16, #tpu.memory_space<vmem>>, vector<16x128xbf16>
    %cst = arith.constant dense<0.000000e+00> : vector<8x128xf32>
    %3 = tpu.matmul %1, %2, %cst {dimension_numbers = #tpu.dot_dimension_numbers<[1], [0], [0], [1], [0, 0, 1, 1], [], []>} : vector<8x16xbf16>, vector<16x128xbf16>, vector<8x128xf32> -> vector<8x128xf32>
    %c0_3 = arith.constant 0 : index
    %c0_4 = arith.constant 0 : index
    %4 = vector.load %arg2[%c0_3, %c0_4] : memref<8x24xf32, #tpu.memory_space<vmem>>, vector<8x24xf32>
    %5 = arith.truncf %4 : vector<8x24xf32> to vector<8x24xbf16>
    %c0_5 = arith.constant 0 : index
    %c0_6 = arith.constant 0 : index
    %6 = vector.load %arg5[%c0_5, %c0_6] : memref<24x128xbf16, #tpu.memory_space<vmem>>, vector<24x128xbf16>
    %cst_7 = arith.constant dense<0.000000e+00> : vector<8x128xf32>
    %7 = tpu.matmul %5, %6, %cst_7 {dimension_numbers = #tpu.dot_dimension_numbers<[1], [0], [0], [1], [0, 0, 1, 1], [], []>} : vector<8x24xbf16>, vector<24x128xbf16>, vector<8x128xf32> -> vector<8x128xf32>
    %8 = arith.addf %3, %7 : vector<8x128xf32>
    %c0_8 = arith.constant 0 : index
    %c0_9 = arith.constant 0 : index
    %9 = vector.load %arg3[%c0_8, %c0_9] : memref<8x32xf32, #tpu.memory_space<vmem>>, vector<8x32xf32>
    %10 = arith.truncf %9 : vector<8x32xf32> to vector<8x32xbf16>
    %c0_10 = arith.constant 0 : index
    %c0_11 = arith.constant 0 : index
    %11 = vector.load %arg6[%c0_10, %c0_11] : memref<32x128xbf16, #tpu.memory_space<vmem>>, vector<32x128xbf16>
    %cst_12 = arith.constant dense<0.000000e+00> : vector<8x128xf32>
    %12 = tpu.matmul %10, %11, %cst_12 {dimension_numbers = #tpu.dot_dimension_numbers<[1], [0], [0], [1], [0, 0, 1, 1], [], []>} : vector<8x32xbf16>, vector<32x128xbf16>, vector<8x128xf32> -> vector<8x128xf32>
    %13 = arith.addf %8, %12 : vector<8x128xf32>
    %c0_13 = arith.constant 0 : index
    %c0_14 = arith.constant 0 : index
    %14 = vector.load %arg7[%c0_13, %c0_14] : memref<1x128xf32, #tpu.memory_space<vmem>>, vector<1x128xf32>
    %15 = vector.broadcast %14 : vector<1x128xf32> to vector<8x128xf32>
    %16 = arith.addf %13, %15 : vector<8x128xf32>
    %cst_15 = arith.constant 0.000000e+00 : f32
    %17 = vector.broadcast %cst_15 : f32 to vector<8x128xf32>
    %18 = arith.maximumf %16, %17 : vector<8x128xf32>
    %c0_16 = arith.constant 0 : index
    %c0_17 = arith.constant 0 : index
    %19 = vector.load %arg8[%c0_16, %c0_17] : memref<128x128xbf16, #tpu.memory_space<vmem>>, vector<128x128xbf16>
    %c0_18 = arith.constant 0 : index
    %c0_19 = arith.constant 0 : index
    %20 = vector.load %arg9[%c0_18, %c0_19] : memref<1x128xf32, #tpu.memory_space<vmem>>, vector<1x128xf32>
    %21 = arith.truncf %18 : vector<8x128xf32> to vector<8x128xbf16>
    %cst_20 = arith.constant dense<0.000000e+00> : vector<8x128xf32>
    %22 = tpu.matmul %21, %19, %cst_20 {dimension_numbers = #tpu.dot_dimension_numbers<[1], [0], [0], [1], [0, 0, 1, 1], [], []>} : vector<8x128xbf16>, vector<128x128xbf16>, vector<8x128xf32> -> vector<8x128xf32>
    %23 = vector.broadcast %20 : vector<1x128xf32> to vector<8x128xf32>
    %24 = arith.addf %22, %23 : vector<8x128xf32>
    %cst_21 = arith.constant 0.000000e+00 : f32
    %25 = vector.broadcast %cst_21 : f32 to vector<8x128xf32>
    %26 = arith.maximumf %24, %25 : vector<8x128xf32>
    %c0_22 = arith.constant 0 : index
    %c0_23 = arith.constant 0 : index
    %27 = vector.load %arg10[%c0_22, %c0_23] : memref<8x128xbf16, #tpu.memory_space<vmem>>, vector<8x128xbf16>
    %28 = tpu.transpose %26, [1, 0] : vector<8x128xf32> -> vector<128x8xf32>
    %29 = arith.truncf %28 : vector<128x8xf32> to vector<128x8xbf16>
    %cst_24 = arith.constant dense<0.000000e+00> : vector<8x8xf32>
    %30 = tpu.matmul %27, %29, %cst_24 {dimension_numbers = #tpu.dot_dimension_numbers<[1], [0], [0], [1], [0, 0, 1, 1], [], []>} : vector<8x128xbf16>, vector<128x8xbf16>, vector<8x8xf32> -> vector<8x8xf32>
    %c0_25 = arith.constant 0 : index
    %c0_26 = arith.constant 0 : index
    %31 = vector.load %arg11[%c0_25, %c0_26] : memref<8x1xf32, #tpu.memory_space<vmem>>, vector<8x1xf32>
    %32 = vector.broadcast %31 : vector<8x1xf32> to vector<8x8xf32>
    %33 = arith.addf %30, %32 : vector<8x8xf32>
    %c0_27 = arith.constant 0 : index
    %c0_28 = arith.constant 0 : index
    %34 = vector.load %arg12[%c0_27, %c0_28] : memref<8x8xf32, #tpu.memory_space<vmem>>, vector<8x8xf32>
    tpu.vector_store %arg12[%c0_27, %c0_28], %33 {strides = array<i32>} : memref<8x8xf32, #tpu.memory_space<vmem>>, vector<8x8xf32>,
    return
  }
  func.func @transform_0(%arg0: i32) -> (i32, i32) {
    %c0_i32 = arith.constant 0 : i32
    %c0_i32_0 = arith.constant 0 : i32
    return %arg0, %c0_i32 : i32, i32
  }
  func.func @transform_1(%arg0: i32) -> (i32, i32) {
    %c0_i32 = arith.constant 0 : i32
    %c0_i32_0 = arith.constant 0 : i32
    return %arg0, %c0_i32 : i32, i32
  }
  func.func @transform_2(%arg0: i32) -> (i32, i32) {
    %c0_i32 = arith.constant 0 : i32
    %c0_i32_0 = arith.constant 0 : i32
    return %arg0, %c0_i32 : i32, i32
  }
  func.func @transform_3(%arg0: i32) -> (i32, i32) {
    %c0_i32 = arith.constant 0 : i32
    %c0_i32_0 = arith.constant 0 : i32
    %c0_i32_1 = arith.constant 0 : i32
    return %c0_i32, %c0_i32_0 : i32, i32
  }
  func.func @transform_4(%arg0: i32) -> (i32, i32) {
    %c0_i32 = arith.constant 0 : i32
    %c0_i32_0 = arith.constant 0 : i32
    %c0_i32_1 = arith.constant 0 : i32
    return %c0_i32, %c0_i32_0 : i32, i32
  }
  func.func @transform_5(%arg0: i32) -> (i32, i32) {
    %c0_i32 = arith.constant 0 : i32
    %c0_i32_0 = arith.constant 0 : i32
    %c0_i32_1 = arith.constant 0 : i32
    return %c0_i32, %c0_i32_0 : i32, i32
  }
  func.func @transform_6(%arg0: i32) -> (i32, i32) {
    %c0_i32 = arith.constant 0 : i32
    %c0_i32_0 = arith.constant 0 : i32
    %c0_i32_1 = arith.constant 0 : i32
    return %c0_i32, %c0_i32_0 : i32, i32
  }
  func.func @transform_7(%arg0: i32) -> (i32, i32) {
    %c0_i32 = arith.constant 0 : i32
    %c0_i32_0 = arith.constant 0 : i32
    %c0_i32_1 = arith.constant 0 : i32
    return %c0_i32, %c0_i32_0 : i32, i32
  }
  func.func @transform_8(%arg0: i32) -> (i32, i32) {
    %c0_i32 = arith.constant 0 : i32
    %c0_i32_0 = arith.constant 0 : i32
    %c0_i32_1 = arith.constant 0 : i32
    return %c0_i32, %c0_i32_0 : i32, i32
  }
  func.func @transform_9(%arg0: i32) -> (i32, i32) {
    %c0_i32 = arith.constant 0 : i32
    %c0_i32_0 = arith.constant 0 : i32
    %c0_i32_1 = arith.constant 0 : i32
    return %c0_i32, %c0_i32_0 : i32, i32
  }
  func.func @transform_10(%arg0: i32) -> (i32, i32) {
    %c0_i32 = arith.constant 0 : i32
    %c0_i32_0 = arith.constant 0 : i32
    %c0_i32_1 = arith.constant 0 : i32
    return %c0_i32, %c0_i32_0 : i32, i32
  }
  func.func @transform_11(%arg0: i32) -> (i32, i32) {
    %c0_i32 = arith.constant 0 : i32
    %c0_i32_0 = arith.constant 0 : i32
    return %c0_i32, %arg0 : i32, i32
  }
}

</mosaic_0001>

<bundles_post_ra>
// kernel: mlpnet_forward.1
= control target key start
LH: loop header
LB: loop body
LE: loop exit
PB: predicated region body
PF: predicated region fallthrough
CT: control target
= control target key end

     0   :  { %16 = vsyncpa [#allocation3], 0  ;;  %s995_s0 = inlined_call_operand.vmem [shape: f32[8,16], index: 0, kind: input, shape index: {}]   ;;  %s996_s1 = inlined_call_operand.vmem [shape: f32[8,24], index: 1, kind: input, shape index: {}]   ;;  %s997_s2 = inlined_call_operand.vmem [shape: f32[8,32], index: 2, kind: input, shape index: {}]   ;;  %s998_s3 = inlined_call_operand.hbm [shape: bf16[16,128], index: 3, kind: input, shape index: {}]   ;;  %s999_s4 = inlined_call_operand.hbm [shape: bf16[24,128], index: 4, kind: input, shape index: {}]   ;;  %s1000_s5 = inlined_call_operand.vmem [shape: bf16[32,128], index: 5, kind: input, shape index: {}]   ;;  %s1001_s6 = inlined_call_operand.hbm [shape: f32[1,128], index: 6, kind: input, shape index: {}]   ;;  %s1002_s7 = inlined_call_operand.hbm [shape: bf16[128,128], index: 7, kind: input, shape index: {}]   ;;  %s1003_s8 = inlined_call_operand.hbm [shape: f32[1,128], index: 8, kind: input, shape index: {}]   ;;  %s1004_s9 = inlined_call_operand.hbm [shape: bf16[8,128], index: 9, kind: input, shape index: {}]   ;;  %s1005_s10 = inlined_call_operand.vmem [shape: f32[8,1], index: 10, kind: input, shape index: {}]   ;;  %s1006_s11 = inlined_call_operand.vmem [shape: f32[8,8], index: 11, kind: output, shape index: {}]  }
   0x1   :  { %17 = vsyncpa [#allocation5], 0 }
   0x2   :  { %18 = vsyncpa [#allocation8], 0 }
   0x3   :  { %19 = vsyncpa [#allocation11], 0  ;;  %s784_s17 = smov [#allocation4]   ;;  %s785_s19 = smov [#allocation7]  }
   0x4   :  { %s43_s18 = sshll.u32 %s784_s17, 4  ;;  %s67_s20 = sshll.u32 %s785_s19, 4  ;;  %s44_s18 = int_to_ptr.vmem [resolvable:$true] %s43_s18  ;;  %s855_s20 = int_to_ptr.vmem [resolvable:$true] %s67_s20 }
   0x5   :  { %s644_s23 = scalar_lea.hbm %s999_s4, 192 }
   0x6   :  { %p645_p0 = scmp.ne.s32.totalorder %s999_s4, %s644_s23  ;;  %p648_p1 = scmp.lt.u32.totalorder %s644_s23, %s999_s4 }
   0x8   :  { %p650_p2 = pnand %p648_p1, %p645_p0 }
   0xa   :  { %653 = shalt.err (!%p650_p2)
}
   0xb   :  { %s654_s28 = scalar_lea.vmem %s44_s18, 192  ;;  %p659_p4 = scmp.lt.s32.totalorder %s44_s18, %s44_s18 }
   0xc   :  { %p655_p3 = scmp.ne.s32.totalorder %s44_s18, %s654_s28  ;;  %p660_p5 = scmp.lt.s32.totalorder %s654_s28, %s654_s28 }
   0xe   :  { %p661_p6 = por %p660_p5, %p659_p4 }
  0x10   :  { %p662_p7 = pnand %p661_p6, %p655_p3 }
  0x12   :  { %665 = shalt.err (!%p662_p7)
}
  0x13   :  { %s786_s29 = smov 64   ;;  %s787_s30 = smov 4  }
  0x14   :  { %49 = dma.hbm_to_vmem [thread:$0]  %s999_s4, 192, %s44_s18, [#allocation5], %s786_s29, %s786_s29, %s787_s30  }
  0x15   :  { %s666_s16 = scalar_lea.hbm %s1002_s7, 1024 }
  0x16   :  { %p667_p8 = scmp.ne.s32.totalorder %s1002_s7, %s666_s16  ;;  %p670_p9 = scmp.lt.u32.totalorder %s666_s16, %s1002_s7 }
  0x18   :  { %p672_p10 = pnand %p670_p9, %p667_p8 }
  0x1a   :  { %675 = shalt.err (!%p672_p10)
}
  0x1b   :  { %s676_s23 = scalar_lea.vmem %s855_s20, 1024  ;;  %p681_p12 = scmp.lt.s32.totalorder %s855_s20, %s855_s20 }
  0x1c   :  { %p677_p11 = scmp.ne.s32.totalorder %s855_s20, %s676_s23  ;;  %p682_p13 = scmp.lt.s32.totalorder %s676_s23, %s676_s23 }
  0x1e   :  { %p683_p0 = por %p682_p13, %p681_p12 }
  0x20   :  { %p684_p1 = pnand %p683_p0, %p677_p11 }
  0x22   :  { %687 = shalt.err (!%p684_p1)
}
  0x23   :  { %73 = dma.hbm_to_vmem [thread:$0]  %s1002_s7, 1024, %s855_s20, [#allocation8], %s786_s29, %s786_s29, %s787_s30  }
  0x24   :  { %s788_s24 = smov [#allocation2]   ;;  %s789_s26 = smov [#allocation6]  }
  0x25   :  { %s31_s25 = sshll.u32 %s788_s24, 4  ;;  %s58_s27 = sshll.u32 %s789_s26, 4  ;;  %s32_s25 = int_to_ptr.vmem [resolvable:$true] %s31_s25  ;;  %s59_s27 = int_to_ptr.vmem [resolvable:$true] %s58_s27 }
  0x26   :  { %s688_s13 = scalar_lea.hbm %s998_s3, 128 }
  0x27   :  { %p689_p2 = scmp.ne.s32.totalorder %s998_s3, %s688_s13  ;;  %p692_p3 = scmp.lt.u32.totalorder %s688_s13, %s998_s3 }
  0x29   :  { %p694_p4 = pnand %p692_p3, %p689_p2 }
  0x2b   :  { %697 = shalt.err (!%p694_p4)
}
  0x2c   :  { %s698_s7 = scalar_lea.vmem %s32_s25, 128  ;;  %p703_p6 = scmp.lt.s32.totalorder %s32_s25, %s32_s25 }
  0x2d   :  { %p699_p5 = scmp.ne.s32.totalorder %s32_s25, %s698_s7  ;;  %p704_p7 = scmp.lt.s32.totalorder %s698_s7, %s698_s7 }
  0x2f   :  { %p705_p8 = por %p704_p7, %p703_p6 }
  0x31   :  { %p706_p9 = pnand %p705_p8, %p699_p5 }
  0x33   :  { %709 = shalt.err (!%p706_p9)
}
  0x34   :  { %37 = dma.hbm_to_vmem [thread:$0]  %s998_s3, 128, %s32_s25, [#allocation3], %s786_s29, %s786_s29, %s787_s30  }
  0x35   :  { %s710_s23 = scalar_lea.hbm %s1001_s6, 16 }
  0x36   :  { %p711_p10 = scmp.ne.s32.totalorder %s1001_s6, %s710_s23  ;;  %p714_p11 = scmp.lt.u32.totalorder %s710_s23, %s1001_s6 }
  0x38   :  { %p716_p12 = pnand %p714_p11, %p711_p10 }
  0x3a   :  { %719 = shalt.err (!%p716_p12)
}
  0x3b   :  { %s720_s28 = scalar_lea.vmem %s59_s27, 16  ;;  %s724_s12 = scalar_lea.vmem %s59_s27, 32 }
  0x3c   :  { %p721_p13 = scmp.ne.s32.totalorder %s59_s27, %s720_s28  ;;  %p725_p0 = scmp.lt.s32.totalorder %s59_s27, %s59_s27 }
  0x3d   :  { %p726_p1 = scmp.lt.s32.totalorder %s724_s12, %s720_s28 }
  0x3f   :  { %p727_p2 = por %p726_p1, %p725_p0 }
  0x41   :  { %p728_p3 = pnand %p727_p2, %p721_p13 }
  0x43   :  { %731 = shalt.err (!%p728_p3)
}
  0x44   :  { %61 = dma.hbm_to_vmem [thread:$0]  %s1001_s6, 16, %s59_s27, [#allocation5]  }
  0x45   :  { %s790_s30 = smov [#allocation9]   ;;  %s791_s13 = smov [#allocation10]  }
  0x46   :  { %s80_s25 = sshll.u32 %s790_s30, 4  ;;  %s90_s14 = sshll.u32 %s791_s13, 4  ;;  %s81_s25 = int_to_ptr.vmem [resolvable:$true] %s80_s25  ;;  %s91_s14 = int_to_ptr.vmem [resolvable:$true] %s90_s14 }
  0x47   :  { %s732_s17 = scalar_lea.hbm %s1003_s8, 16 }
  0x48   :  { %p733_p4 = scmp.ne.s32.totalorder %s1003_s8, %s732_s17  ;;  %p736_p5 = scmp.lt.u32.totalorder %s732_s17, %s1003_s8 }
  0x4a   :  { %p738_p6 = pnand %p736_p5, %p733_p4 }
  0x4c   :  { %741 = shalt.err (!%p738_p6)
}
  0x4d   :  { %s742_s6 = scalar_lea.vmem %s81_s25, 16  ;;  %s746_s27 = scalar_lea.vmem %s81_s25, 32 }
  0x4e   :  { %p743_p7 = scmp.ne.s32.totalorder %s81_s25, %s742_s6  ;;  %p747_p8 = scmp.lt.s32.totalorder %s81_s25, %s81_s25 }
  0x4f   :  { %p748_p9 = scmp.lt.s32.totalorder %s746_s27, %s742_s6 }
  0x51   :  { %p749_p10 = por %p748_p9, %p747_p8 }
  0x53   :  { %p750_p11 = pnand %p749_p10, %p743_p7 }
  0x55   :  { %753 = shalt.err (!%p750_p11)
}
  0x56   :  { %83 = dma.hbm_to_vmem [thread:$0]  %s1003_s8, 16, %s81_s25, [#allocation8]  }
  0x57   :  { %s754_s24 = scalar_lea.hbm %s1004_s9, 64 }
  0x58   :  { %p755_p12 = scmp.ne.s32.totalorder %s1004_s9, %s754_s24  ;;  %p758_p13 = scmp.lt.u32.totalorder %s754_s24, %s1004_s9 }
  0x5a   :  { %p760_p0 = pnand %p758_p13, %p755_p12 }
  0x5c   :  { %763 = shalt.err (!%p760_p0)
}
  0x5d   :  { %s764_s29 = scalar_lea.vmem %s91_s14, 64  ;;  %p769_p2 = scmp.lt.s32.totalorder %s91_s14, %s91_s14 }
  0x5e   :  { %p765_p1 = scmp.ne.s32.totalorder %s91_s14, %s764_s29  ;;  %p770_p3 = scmp.lt.s32.totalorder %s764_s29, %s764_s29 }
  0x60   :  { %p771_p4 = por %p770_p3, %p769_p2 }
  0x62   :  { %p772_p5 = pnand %p771_p4, %p765_p1 }
  0x64   :  { %775 = shalt.err (!%p772_p5)
}
  0x65   :  { %93 = dma.hbm_to_vmem [thread:$0]  %s1004_s9, 64, %s91_s14, [#allocation11]  }
  0x66   :  { %776 = dma.done.wait [#allocation3], 128  }
  0x67   :  { %777 = vsyncadd [#allocation3], 4294967168 }
  0x68   :  { %778 = dma.done.wait [#allocation5], 208  }
  0x69   :  { %779 = vsyncadd [#allocation5], 4294967088 }
  0x6a   :  { %780 = dma.done.wait [#allocation8], 1040  }
  0x6b   :  { %781 = vsyncadd [#allocation8], 4294966256 }
  0x6c   :  { %782 = dma.done.wait [#allocation11], 64  }
  0x6d   :  { %783 = vsyncadd [#allocation11], 4294967232  ;;  %v792_v0 = vmov 0.0   ;;  %vm793_vm0 = vmmov 0   ;;  %v631_v1 = vld [vmem:[#allocation4] sm:$0xff]   ;;  %v632_v2 = vld [vmem:[#allocation2] sm:$0xff]  }
  0x6e   :  { %557 = vmatprep.subr.bf16.mxu0 %v792_v0  ;;  %565 = vmatprep.subr.bf16.mxu1 %v792_v0  ;;  %vm137_vm1 = vcmask 1043456   ;;  %v115_v3 = vld [vmem:[%s995_s0] sm:$0xff]  ;;  %v633_v4 = vld [vmem:[#allocation4 + $0x8] ss:$0 sps:$4 sm:$0xff]   ;;  %vm187_vm2 = vcmask 130048   ;;  %v635_v10 = vld [vmem:[%s1000_s5 + $0x8] sm:$0xff]  }
  0x6f   :  { %567 = vmatprep.mubr.msk.bf16.mxu1 %vm793_vm0, %v792_v0  ;;  %561 = vmatprep.mubr.msk.bf16.mxu0 %vm793_vm0, %v792_v0  ;;  %v116_v5 = vpack.c.bf16 %v115_v3, %v115_v3  ;;  %v634_v6 = vld [vmem:[%s1000_s5] sm:$0xff]   ;;  %v139_v7 = vsel %vm137_vm1, %v633_v4, 0  ;;  %vm133_vm3 = vcmask 195584   ;;  %v636_v11 = vld [vmem:[#allocation7] sm:$0xff]   ;;  %vm249_vm4 = vcmask 261120   ;;  %v639_v16 = vld [vmem:[#allocation7 + $0x18] sm:$0xff]  }
  0x70   :  { %558 = vmatpush3.bf16.msra.mxu0 %v631_v1  ;;  %566 = vmatpush3.bf16.msra.mxu1 %v632_v2  ;;  %v119_v8 = vld [vmem:[%s996_s1] sm:$0xff]  ;;  %v640_v17 = vld [vmem:[#allocation7 + $0x20] sm:$0xff]   ;;  %v643_v20 = vld [vmem:[#allocation7 + $0x38] sm:$0xff]   ;;  %v794_v46 = vmov 0   ;;  %vm503_vm5 = vcmask 64512  }
  0x71   :  { %559 = vmatprep.subr.bf16.mxu0 %v792_v0  ;;  %571 = vmatprep.subr.bf16.mxu1 %v792_v0  ;;  %v120_v9 = vpack.c.bf16 %v119_v8, %v119_v8  ;;  %v231_v12 = vld [vmem:[%s997_s2] sm:$0xff]  ;;  %v521_v31 = vld [vmem:[#allocation6] ss:$0 sm:$0xff]  ;;  %v522_v39 = vld [vmem:[#allocation9] ss:$0 sm:$0xff] }
  0x72   :  { %v637_v13 = vld [vmem:[#allocation7 + $0x8] sm:$0xff]   ;;  %v232_v14 = vpack.c.bf16 %v231_v12, %v231_v12  ;;  %v638_v15 = vld [vmem:[#allocation7 + $0x10] sm:$0xff]  }
  0x73   :  { %568 = vmatmul.mubr.msk.bf16.vlgmr.msra.gmra.mrb[0].mxu1 %vm187_vm2, %v116_v5  ;;  %v641_v18 = vld [vmem:[#allocation7 + $0x28] sm:$0xff]   ;;  %v642_v19 = vld [vmem:[#allocation7 + $0x30] sm:$0xff]  }
  0x74   :  { %560 = vmatpush3.bf16.msra.mxu0 %v139_v7  ;;  %572 = vmatpush3.bf16.msra.mxu1 %v634_v6  ;;  %v457_v47 = vld [vmem:[%s1005_s10] sm:$0xff] }
  0x75   :  { %575 = vmatprep.mubr.msk.bf16.mxu1 %vm793_vm0, %v792_v0  ;;  %573 = vmatprep.subr.bf16.mxu1 %v792_v0 }
  0x76   :  { %579 = vmatprep.subr.bf16.mxu0 %v792_v0 }
  0x77   :  { %562 = vmatmul.mubr.msk.bf16.vlgmr.msra.gmra.mrb[0].mxu0 %vm133_vm3, %v120_v9  ;;  %v416_v9 = vld [vmem:[#allocation10] sm:$0xf] }
  0x78   :  { %580 = vmatpush3.bf16.msra.mxu0 %v636_v11  ;;  %595 = vmatprep.mubr.msk.bf16.mxu0 %vm793_vm0, %v792_v0 }
  0x79   :  { %574 = vmatpush3.bf16.msra.mxu1 %v635_v10  ;;  %581 = vmatprep.subr.bf16.mxu0 %v792_v0 }
  0x7a   :  { %599 = vmatprep.subr.bf16.mxu1 %v792_v0 }
  0x7c   :  { %576 = vmatmul.mubr.msk.bf16.vlgmr.msra.gmra.mrb[4].mxu1 %vm249_vm4, %v232_v14  ;;  %582 = vmatpush3.bf16.msra.mxu0 %v637_v13 }
  0x7d   :  { %583 = vmatprep.subr.bf16.mxu0 %v792_v0  ;;  %615 = vmatprep.mubr.msk.bf16.mxu1 %vm793_vm0, %v792_v0 }
  0x80   :  { %584 = vmatpush3.bf16.msra.mxu0 %v638_v15 }
  0x81   :  { %585 = vmatprep.subr.bf16.mxu0 %v792_v0 }
  0x84   :  { %586 = vmatpush3.bf16.msra.mxu0 %v639_v16 }
  0x85   :  { %587 = vmatprep.subr.bf16.mxu0 %v792_v0 }
  0x88   :  { %588 = vmatpush3.bf16.msra.mxu0 %v640_v17 }
  0x89   :  { %589 = vmatprep.subr.bf16.mxu0 %v792_v0 }
  0x8c   :  { %590 = vmatpush3.bf16.msra.mxu0 %v641_v18 }
  0x8d   :  { %591 = vmatprep.subr.bf16.mxu0 %v792_v0 }
  0x90   :  { %592 = vmatpush3.bf16.msra.mxu0 %v642_v19 }
  0x91   :  { %593 = vmatprep.subr.bf16.mxu0 %v792_v0 }
  0x94   :  { %594 = vmatpush3.bf16.msra.mxu0 %v643_v20 }
 0x146   :  { %v225_v21 = vpop.f32.mrb[0].mxu1 }
 0x147   :  { %v569_v22 = vpop.f32.mrb[1].mxu1 }
 0x148   :  { %v228_v23 = vpop.f32.mrb[2].mxu1 }
 0x149   :  { %v570_v24 = vpop.f32.mrb[3].mxu1 }
 0x14a   :  { %v175_v25 = vpop.f32.mrb[0].mxu0 }
 0x14b   :  { %v226_v26 = vadd.f32 %v225_v21, %v175_v25  ;;  %v563_v27 = vpop.f32.mrb[1].mxu0 }
 0x14c   :  { %v178_v28 = vpop.f32.mrb[2].mxu0 }
 0x14d   :  { %v564_v29 = vpop.f32.mrb[3].mxu0 }
 0x14f   :  { %v287_v30 = vpop.f32.mrb[4].mxu1 }
 0x150   :  { %v293_v32 = vadd.f32 %v287_v30, %v226_v26  ;;  %v577_v33 = vpop.f32.mrb[5].mxu1 }
 0x151   :  { %v290_v34 = vpop.f32.mrb[6].mxu1 }
 0x152   :  { %v301_v35 = vadd.f32 %v521_v31, %v293_v32  ;;  %v578_v36 = vpop.f32.mrb[7].mxu1 }
 0x154   :  { %v302_v37 = vmax.f32 %v301_v35, 0.0 }
 0x156   :  { %v320_v38 = vpack.c.bf16 %v302_v37, %v302_v37 }
 0x158   :  { %596 = vmatmul.mubr.bf16.vlgmr.msra.gmra.mrb[4].mxu0 %v320_v38 }
 0x22b   :  { %v409_v40 = vpop.f32.mrb[4].mxu0 }
 0x22c   :  { %v597_v41 = vpop.f32.mrb[5].mxu0  ;;  %v410_v42 = vadd.f32 %v522_v39, %v409_v40 }
 0x22d   :  { %v412_v43 = vpop.f32.mrb[6].mxu0 }
 0x22e   :  { %v598_v44 = vpop.f32.mrb[7].mxu0  ;;  %v415_v45 = vmax.f32 %v410_v42, 0.0 }
 0x230   :  { %417 = vxpose.xlu0.b32.start.end [1/1] (short) %v415_v45, 128 }
 0x259   :  { %630 = vset.pattern.permute.xlu0 %v794_v46 }
 0x295   :  { %460 = vperm.xlu0 %630, %v457_v47  }
 0x2b0   :  { %v433_v48 = vpop.trf.xlu0 }
 0x2b4   :  { %v434_v49 = vpop.trf.xlu0 }
 0x2b5   :  { %v449_v50 = vpack.c.bf16 %v434_v49, %v433_v48 }
 0x2b7   :  { %600 = vmatpush3.bf16.msra.mxu1 %v449_v50 }
 0x2b8   :  { %v435_v51 = vpop.trf.xlu0  ;;  %601 = vmatprep.subr.bf16.mxu1 %v792_v0 }
 0x2bc   :  { %v436_v52 = vpop.trf.xlu0 }
 0x2bd   :  { %v450_v53 = vpack.c.bf16 %v436_v52, %v435_v51 }
 0x2bf   :  { %602 = vmatpush3.bf16.msra.mxu1 %v450_v53 }
 0x2c0   :  { %v437_v54 = vpop.trf.xlu0  ;;  %603 = vmatprep.subr.bf16.mxu1 %v792_v0 }
 0x2c4   :  { %v438_v55 = vpop.trf.xlu0 }
 0x2c5   :  { %v451_v56 = vpack.c.bf16 %v438_v55, %v437_v54 }
 0x2c7   :  { %604 = vmatpush3.bf16.msra.mxu1 %v451_v56 }
 0x2c8   :  { %v439_v57 = vpop.trf.xlu0  ;;  %605 = vmatprep.subr.bf16.mxu1 %v792_v0 }
 0x2cc   :  { %v440_v58 = vpop.trf.xlu0 }
 0x2cd   :  { %v452_v59 = vpack.c.bf16 %v440_v58, %v439_v57 }
 0x2cf   :  { %606 = vmatpush3.bf16.msra.mxu1 %v452_v59 }
 0x2d0   :  { %v441_v60 = vpop.trf.xlu0  ;;  %607 = vmatprep.subr.bf16.mxu1 %v792_v0 }
 0x2d4   :  { %v442_v61 = vpop.trf.xlu0 }
 0x2d5   :  { %v453_v62 = vpack.c.bf16 %v442_v61, %v441_v60 }
 0x2d7   :  { %608 = vmatpush3.bf16.msra.mxu1 %v453_v62 }
 0x2d8   :  { %v443_v63 = vpop.trf.xlu0  ;;  %609 = vmatprep.subr.bf16.mxu1 %v792_v0 }
 0x2dc   :  { %v444_v1 = vpop.trf.xlu0 }
 0x2dd   :  { %v454_v2 = vpack.c.bf16 %v444_v1, %v443_v63 }
 0x2df   :  { %610 = vmatpush3.bf16.msra.mxu1 %v454_v2 }
 0x2e0   :  { %v445_v3 = vpop.trf.xlu0  ;;  %611 = vmatprep.subr.bf16.mxu1 %v792_v0 }
 0x2e4   :  { %v446_v4 = vpop.trf.xlu0 }
 0x2e5   :  { %v455_v5 = vpack.c.bf16 %v446_v4, %v445_v3 }
 0x2e7   :  { %612 = vmatpush3.bf16.msra.mxu1 %v455_v5 }
 0x2e8   :  { %v447_v6 = vpop.trf.xlu0  ;;  %613 = vmatprep.subr.bf16.mxu1 %v792_v0 }
 0x2ec   :  { %v448_v7 = vpop.trf.xlu0 }
 0x2ed   :  { %v456_v8 = vpack.c.bf16 %v448_v7, %v447_v6 }
 0x2ef   :  { %614 = vmatpush3.bf16.msra.mxu1 %v456_v8 }
 0x2f2   :  { %616 = vmatmul.mubr.bf16.vlgmr.msra.gmra.mrb[8].mxu1 %v416_v9 }
 0x314   :  { %v461_v10 = vpop.permute.xlu0 %460 }
 0x3c5   :  { %v497_v11 = vpop.f32.mrb[8].mxu1 }
 0x3c6   :  { %v498_v12 = vadd.f32 %v497_v11, %v461_v10  ;;  %v617_v13 = vpop.f32.mrb[9].mxu1 }
 0x3c7   :  { %v500_v14 = vpop.f32.mrb[10].mxu1 }
 0x3c8   :  { %504 = vst.msk [vmem:[%s1006_s11] sm:$0xff] %vm503_vm5, %v498_v12  ;;  %v618_v15 = vpop.f32.mrb[11].mxu1 }
 0x3c9   :  { %509 = vsyncpa [#allocation3], 1 }
 0x3ca   :  { %510 = vsyncpa [#allocation5], 1 }
 0x3cb   :  { %511 = vsyncpa [#allocation8], 1 }
 0x3cc   :  { %512 = vsyncpa [#allocation11], 1 }

</bundles_post_ra>
